<compile_context>
chip_gen: v6e
topology: v6e:2x2x1
jax: 0.10.0
libtpu: 0.0.40
codegen_flags: <defaults>
</compile_context>

<pallas_src>
import functools

import jax
import jax.numpy as jnp
from jax import lax
from jax.experimental import pallas as pl
from jax.experimental.pallas import tpu as pltpu

_NEG_BIG = -1.0e30  # finite "minus infinity" for padded vocab columns


def decoder_step_kernel(ids_ref, h_ref, c_ref, wvg_ref, whg_ref, bg_ref,
                        wo_ref, bo_ref, pred_ref, h_out_ref, c_out_ref):
    B, H = h_ref.shape
    V = wvg_ref.shape[0]
    hp = lax.Precision.HIGHEST

    # ---- Embedding lookup + input gate matmul fused: onehot @ (emb @ W_ih.T) -------
    ids = ids_ref[...]                                                  # (B, 1) int32
    onehot = (lax.broadcasted_iota(jnp.int32, (B, V), 1) == ids).astype(jnp.float32)

    h = h_ref[...]                                                      # (B, H)
    c = c_ref[...]                                                      # (B, H)

    gates = (jnp.dot(onehot, wvg_ref[...],
                     preferred_element_type=jnp.float32, precision=hp)
             + jnp.dot(h, whg_ref[...],
                       preferred_element_type=jnp.float32, precision=hp)
             + bg_ref[...])                                             # (B, 4H)

    # Full-vreg activation with a single tanh pass:
    #   g block:  tanh(x)
    #   others :  sigmoid(x) = 0.5 * (1 + tanh(x / 2))
    lane = lax.broadcasted_iota(jnp.int32, gates.shape, 1)
    is_g = jnp.logical_and(lane >= 2 * H, lane < 3 * H)
    t = jnp.tanh(jnp.where(is_g, gates, 0.5 * gates))
    act = jnp.where(is_g, t, 0.5 * (t + 1.0))                           # (B, 4H)

    i_g = act[:, 0 * H:1 * H]
    f_g = act[:, 1 * H:2 * H]
    g_g = act[:, 2 * H:3 * H]
    o_g = act[:, 3 * H:4 * H]

    c_new = f_g * c + i_g * g_g
    h_new = o_g * jnp.tanh(c_new)

    # State outputs (each aliased onto its input buffer).
    h_out_ref[...] = h_new
    c_out_ref[...] = c_new

    # ---- fc_out (lane-dense padded O) + log_softmax ---------------------------------
    logits = (jnp.dot(h_new, wo_ref[...],
                      preferred_element_type=jnp.float32, precision=hp)
              + bo_ref[...])                                            # (B, O_pad)
    m = jnp.max(logits, axis=1, keepdims=True)
    shifted = logits - m
    lse = jnp.log(jnp.sum(jnp.exp(shifted), axis=1, keepdims=True))
    pred_ref[...] = shifted - lse                                       # unmasked vst


@functools.partial(jax.jit, static_argnames=("output_dim",))
def decoder_forward(input_ids, hidden, cell, params, *, output_dim):
    """Mirrors Decoder.forward.

    input_ids: (B,) int32 token ids
    hidden, cell: (1, B, H) float32
    returns: prediction (B, O), hidden (1, B, H), cell (1, B, H)
    """
    B = input_ids.shape[0]
    H = hidden.shape[-1]
    O_pad = params["w_out_pad"].shape[1]

    ids2d = input_ids.astype(jnp.int32).reshape(B, 1)
    h0 = hidden[0]                                                      # (B, H)
    c0 = cell[0]                                                        # (B, H)

    vmem = pl.BlockSpec(memory_space=pltpu.MemorySpace.VMEM)
    pred_pad, h1, c1 = pl.pallas_call(
        decoder_step_kernel,
        out_shape=(
            jax.ShapeDtypeStruct((B, O_pad), jnp.float32),
            jax.ShapeDtypeStruct((B, H), jnp.float32),
            jax.ShapeDtypeStruct((B, H), jnp.float32),
        ),
        in_specs=[vmem] * 8,
        out_specs=(vmem, vmem, vmem),
        # Donate the state buffers: h (input 1) -> h_out (output 1),
        #                           c (input 2) -> c_out (output 2).
        input_output_aliases={1: 1, 2: 2},
    )(ids2d, h0, c0, params["w_vocab_gates"], params["w_hidden_gates"],
      params["b_gates"], params["w_out_pad"], params["b_out_pad"])

    prediction = pred_pad[:, :output_dim]
    return prediction, h1[None, :, :], c1[None, :, :]


def init_raw_params(key, vocab_size, embedding_dim, hidden_dim, output_dim):
    """PyTorch-layout parameters (same layout as nn.Embedding / nn.LSTM / nn.Linear)."""
    ks = jax.random.split(key, 7)
    s = 0.1
    return {
        "embedding": s * jax.random.normal(ks[0], (vocab_size, embedding_dim), jnp.float32),
        "w_ih": s * jax.random.normal(ks[1], (4 * hidden_dim, embedding_dim), jnp.float32),
        "w_hh": s * jax.random.normal(ks[2], (4 * hidden_dim, hidden_dim), jnp.float32),
        "b_ih": s * jax.random.normal(ks[3], (4 * hidden_dim,), jnp.float32),
        "b_hh": s * jax.random.normal(ks[4], (4 * hidden_dim,), jnp.float32),
        "w_out": s * jax.random.normal(ks[5], (output_dim, hidden_dim), jnp.float32),
        "b_out": s * jax.random.normal(ks[6], (output_dim,), jnp.float32),
    }


def pack_params(raw):
    """One-time repack for the kernel.

    * w_vocab_gates = embedding @ W_ih.T  : fuses the embedding gather with the
      input-side gate matmul (row-select of a precomputed (V, 4H) table).
    * w_hidden_gates = W_hh.T             : hidden-side gate matmul.
    * fc_out padded to a multiple of 128 output columns (lane-dense prediction store).
    """
    hp = lax.Precision.HIGHEST
    hidden_dim = raw["w_hh"].shape[1]
    output_dim = raw["w_out"].shape[0]

    w_vocab_gates = jnp.dot(raw["embedding"], raw["w_ih"].T, precision=hp)   # (V, 4H)
    w_hidden_gates = raw["w_hh"].T                                            # (H, 4H)
    b_gates = (raw["b_ih"] + raw["b_hh"])[None, :]                            # (1, 4H)

    o_pad = ((output_dim + 127) // 128) * 128
    w_out_pad = jnp.zeros((hidden_dim, o_pad), jnp.float32).at[:, :output_dim].set(raw["w_out"].T)
    b_out_pad = jnp.full((1, o_pad), _NEG_BIG, jnp.float32).at[0, :output_dim].set(raw["b_out"])

    return {
        "w_vocab_gates": w_vocab_gates,
        "w_hidden_gates": w_hidden_gates,
        "b_gates": b_gates,
        "w_out_pad": w_out_pad,
        "b_out_pad": b_out_pad,
    }


def decoder_reference(input_ids, hidden, cell, raw):
    """Pure-JAX reference (PyTorch semantics) for correctness checking."""
    hp = lax.Precision.HIGHEST
    x = raw["embedding"][input_ids]                                     # (B, E)
    h, c = hidden[0], cell[0]
    gates = (jnp.dot(x, raw["w_ih"].T, precision=hp)
             + jnp.dot(h, raw["w_hh"].T, precision=hp)
             + raw["b_ih"] + raw["b_hh"])
    H = h.shape[1]
    i = jax.nn.sigmoid(gates[:, 0 * H:1 * H])
    f = jax.nn.sigmoid(gates[:, 1 * H:2 * H])
    g = jnp.tanh(gates[:, 2 * H:3 * H])
    o = jax.nn.sigmoid(gates[:, 3 * H:4 * H])
    c_new = f * c + i * g
    h_new = o * jnp.tanh(c_new)
    logits = jnp.dot(h_new, raw["w_out"].T, precision=hp) + raw["b_out"]
    pred = jax.nn.log_softmax(logits, axis=1)
    return pred, h_new[None, :, :], c_new[None, :, :]


if __name__ == "__main__":
    vocab_size = 16
    embedding_dim = 32
    hidden_dim = 32
    output_dim = 16
    batch = 8

    key = jax.random.PRNGKey(0)
    k_params, k_in, k_h, k_c = jax.random.split(key, 4)

    raw = init_raw_params(k_params, vocab_size, embedding_dim, hidden_dim, output_dim)
    params = pack_params(raw)

    input_ids = jax.random.randint(k_in, (batch,), 0, vocab_size, dtype=jnp.int32)
    hidden = 0.1 * jax.random.normal(k_h, (1, batch, hidden_dim), jnp.float32)
    cell = 0.1 * jax.random.normal(k_c, (1, batch, hidden_dim), jnp.float32)

    pred, h1, c1 = decoder_forward(input_ids, hidden, cell, params, output_dim=output_dim)
    jax.block_until_ready((pred, h1, c1))

    assert pred.shape == (batch, output_dim)
    assert h1.shape == (1, batch, hidden_dim)
    assert c1.shape == (1, batch, hidden_dim)

    # Correctness vs. pure-JAX reference of the PyTorch module.
    pred_r, h1_r, c1_r = decoder_reference(input_ids, hidden, cell, raw)
    assert bool(jnp.allclose(pred, pred_r, atol=1e-4, rtol=1e-4))
    assert bool(jnp.allclose(h1, h1_r, atol=1e-4, rtol=1e-4))
    assert bool(jnp.allclose(c1, c1_r, atol=1e-4, rtol=1e-4))
    # log_softmax rows must sum to 1 in probability space.
    assert bool(jnp.allclose(jnp.sum(jnp.exp(pred), axis=1), 1.0, atol=1e-4))

    print("KERNEL_OK")
</pallas_src>

<mosaic_0001>
module attributes {stable_mosaic.version = 11 : i64} {
  func.func @decoder_step_kernel(%arg0: memref<8x1xi32, #tpu.memory_space<vmem>>, %arg1: memref<8x32xf32, #tpu.memory_space<vmem>>, %arg2: memref<8x32xf32, #tpu.memory_space<vmem>>, %arg3: memref<16x128xf32, #tpu.memory_space<vmem>>, %arg4: memref<32x128xf32, #tpu.memory_space<vmem>>, %arg5: memref<1x128xf32, #tpu.memory_space<vmem>>, %arg6: memref<32x128xf32, #tpu.memory_space<vmem>>, %arg7: memref<1x128xf32, #tpu.memory_space<vmem>>, %arg8: memref<8x128xf32, #tpu.memory_space<vmem>>, %arg9: memref<8x32xf32, #tpu.memory_space<vmem>>, %arg10: memref<8x32xf32, #tpu.memory_space<vmem>>) attributes {dimension_semantics = [], scalar_prefetch = 0 : i64, scratch_operands = 0 : i64, tpu.core_type = #tpu.core_type<tc>} {
    %c0 = arith.constant 0 : index
    %c0_0 = arith.constant 0 : index
    %0 = vector.load %arg0[%c0, %c0_0] : memref<8x1xi32, #tpu.memory_space<vmem>>, vector<8x1xi32>
    %1 = tpu.iota {dimensions = array<i32: 1>} : vector<8x16xi32>
    %2 = vector.broadcast %0 : vector<8x1xi32> to vector<8x16xi32>
    %3 = arith.cmpi eq, %1, %2 : vector<8x16xi32>
    %4 = arith.extui %3 : vector<8x16xi1> to vector<8x16xi32>
    %5 = arith.sitofp %4 : vector<8x16xi32> to vector<8x16xf32>
    %c0_1 = arith.constant 0 : index
    %c0_2 = arith.constant 0 : index
    %6 = vector.load %arg1[%c0_1, %c0_2] : memref<8x32xf32, #tpu.memory_space<vmem>>, vector<8x32xf32>
    %c0_3 = arith.constant 0 : index
    %c0_4 = arith.constant 0 : index
    %7 = vector.load %arg2[%c0_3, %c0_4] : memref<8x32xf32, #tpu.memory_space<vmem>>, vector<8x32xf32>
    %c0_5 = arith.constant 0 : index
    %c0_6 = arith.constant 0 : index
    %8 = vector.load %arg3[%c0_5, %c0_6] : memref<16x128xf32, #tpu.memory_space<vmem>>, vector<16x128xf32>
    %cst = arith.constant dense<0.000000e+00> : vector<8x128xf32>
    %9 = tpu.matmul %5, %8, %cst {dimension_numbers = #tpu.dot_dimension_numbers<[1], [0], [0], [1], [0, 0, 1, 1], [], []>, precision = #tpu.contract_precision<fp32>} : vector<8x16xf32>, vector<16x128xf32>, vector<8x128xf32> -> vector<8x128xf32>
    %c0_7 = arith.constant 0 : index
    %c0_8 = arith.constant 0 : index
    %10 = vector.load %arg4[%c0_7, %c0_8] : memref<32x128xf32, #tpu.memory_space<vmem>>, vector<32x128xf32>
    %cst_9 = arith.constant dense<0.000000e+00> : vector<8x128xf32>
    %11 = tpu.matmul %6, %10, %cst_9 {dimension_numbers = #tpu.dot_dimension_numbers<[1], [0], [0], [1], [0, 0, 1, 1], [], []>, precision = #tpu.contract_precision<fp32>} : vector<8x32xf32>, vector<32x128xf32>, vector<8x128xf32> -> vector<8x128xf32>
    %12 = arith.addf %9, %11 : vector<8x128xf32>
    %c0_10 = arith.constant 0 : index
    %c0_11 = arith.constant 0 : index
    %13 = vector.load %arg5[%c0_10, %c0_11] : memref<1x128xf32, #tpu.memory_space<vmem>>, vector<1x128xf32>
    %14 = vector.broadcast %13 : vector<1x128xf32> to vector<8x128xf32>
    %15 = arith.addf %12, %14 : vector<8x128xf32>
    %16 = tpu.iota {dimensions = array<i32: 1>} : vector<8x128xi32>
    %c64_i32 = arith.constant 64 : i32
    %17 = vector.broadcast %c64_i32 : i32 to vector<8x128xi32>
    %18 = arith.cmpi sge, %16, %17 : vector<8x128xi32>
    %c96_i32 = arith.constant 96 : i32
    %19 = vector.broadcast %c96_i32 : i32 to vector<8x128xi32>
    %20 = arith.cmpi slt, %16, %19 : vector<8x128xi32>
    %21 = arith.andi %18, %20 : vector<8x128xi1>
    %cst_12 = arith.constant 5.000000e-01 : f32
    %22 = vector.broadcast %cst_12 : f32 to vector<8x128xf32>
    %23 = arith.mulf %22, %15 : vector<8x128xf32>
    %24 = arith.select %21, %15, %23 : vector<8x128xi1>, vector<8x128xf32>
    %25 = math.tanh %24 : vector<8x128xf32>
    %cst_13 = arith.constant 1.000000e+00 : f32
    %26 = vector.broadcast %cst_13 : f32 to vector<8x128xf32>
    %27 = arith.addf %25, %26 : vector<8x128xf32>
    %cst_14 = arith.constant 5.000000e-01 : f32
    %28 = vector.broadcast %cst_14 : f32 to vector<8x128xf32>
    %29 = arith.mulf %28, %27 : vector<8x128xf32>
    %30 = arith.select %21, %25, %29 : vector<8x128xi1>, vector<8x128xf32>
    %31 = vector.extract_strided_slice %30 {offsets = [0, 0], sizes = [8, 32], strides = [1, 1]} : vector<8x128xf32> to vector<8x32xf32>
    %32 = vector.extract_strided_slice %30 {offsets = [0, 32], sizes = [8, 32], strides = [1, 1]} : vector<8x128xf32> to vector<8x32xf32>
    %33 = vector.extract_strided_slice %30 {offsets = [0, 64], sizes = [8, 32], strides = [1, 1]} : vector<8x128xf32> to vector<8x32xf32>
    %34 = vector.extract_strided_slice %30 {offsets = [0, 96], sizes = [8, 32], strides = [1, 1]} : vector<8x128xf32> to vector<8x32xf32>
    %35 = arith.mulf %32, %7 : vector<8x32xf32>
    %36 = arith.mulf %31, %33 : vector<8x32xf32>
    %37 = arith.addf %35, %36 : vector<8x32xf32>
    %38 = math.tanh %37 : vector<8x32xf32>
    %39 = arith.mulf %34, %38 : vector<8x32xf32>
    %c0_15 = arith.constant 0 : index
    %c0_16 = arith.constant 0 : index
    %40 = vector.load %arg9[%c0_15, %c0_16] : memref<8x32xf32, #tpu.memory_space<vmem>>, vector<8x32xf32>
    tpu.vector_store %arg9[%c0_15, %c0_16], %39 {strides = array<i32>} : memref<8x32xf32, #tpu.memory_space<vmem>>, vector<8x32xf32>,
    %c0_17 = arith.constant 0 : index
    %c0_18 = arith.constant 0 : index
    %41 = vector.load %arg10[%c0_17, %c0_18] : memref<8x32xf32, #tpu.memory_space<vmem>>, vector<8x32xf32>
    tpu.vector_store %arg10[%c0_17, %c0_18], %37 {strides = array<i32>} : memref<8x32xf32, #tpu.memory_space<vmem>>, vector<8x32xf32>,
    %c0_19 = arith.constant 0 : index
    %c0_20 = arith.constant 0 : index
    %42 = vector.load %arg6[%c0_19, %c0_20] : memref<32x128xf32, #tpu.memory_space<vmem>>, vector<32x128xf32>
    %cst_21 = arith.constant dense<0.000000e+00> : vector<8x128xf32>
    %43 = tpu.matmul %39, %42, %cst_21 {dimension_numbers = #tpu.dot_dimension_numbers<[1], [0], [0], [1], [0, 0, 1, 1], [], []>, precision = #tpu.contract_precision<fp32>} : vector<8x32xf32>, vector<32x128xf32>, vector<8x128xf32> -> vector<8x128xf32>
    %c0_22 = arith.constant 0 : index
    %c0_23 = arith.constant 0 : index
    %44 = vector.load %arg7[%c0_22, %c0_23] : memref<1x128xf32, #tpu.memory_space<vmem>>, vector<1x128xf32>
    %45 = vector.broadcast %44 : vector<1x128xf32> to vector<8x128xf32>
    %46 = arith.addf %43, %45 : vector<8x128xf32>
    %cst_24 = arith.constant dense<0xFF800000> : vector<8xf32>
    %47 = vector.multi_reduction <maximumf>, %46, %cst_24 [1] : vector<8x128xf32> to vector<8xf32>
    %48 = vector.shape_cast %47 : vector<8xf32> to vector<8x1xf32>
    %49 = vector.broadcast %48 : vector<8x1xf32> to vector<8x128xf32>
    %50 = arith.subf %46, %49 : vector<8x128xf32>
    %51 = math.exp %50 : vector<8x128xf32>
    %cst_25 = arith.constant dense<0.000000e+00> : vector<8xf32>
    %52 = vector.multi_reduction <add>, %51, %cst_25 [1] : vector<8x128xf32> to vector<8xf32>
    %53 = vector.shape_cast %52 : vector<8xf32> to vector<8x1xf32>
    %54 = math.log %53 : vector<8x1xf32>
    %55 = vector.broadcast %54 : vector<8x1xf32> to vector<8x128xf32>
    %56 = arith.subf %50, %55 : vector<8x128xf32>
    %c0_26 = arith.constant 0 : index
    %c0_27 = arith.constant 0 : index
    %57 = vector.load %arg8[%c0_26, %c0_27] : memref<8x128xf32, #tpu.memory_space<vmem>>, vector<8x128xf32>
    tpu.vector_store %arg8[%c0_26, %c0_27], %56 {strides = array<i32>} : memref<8x128xf32, #tpu.memory_space<vmem>>, vector<8x128xf32>,
    return
  }
}

</mosaic_0001>

<bundles_post_ra>
// kernel: decoder_forward.1
= control target key start
LH: loop header
LB: loop body
LE: loop exit
PB: predicated region body
PF: predicated region fallthrough
CT: control target
= control target key end

     0   :  { %16 = vsyncpa [#allocation3], 0  ;;  %s2305_s0 = inlined_call_operand.vmem [shape: s32[8,1], index: 0, kind: input, shape index: {}]   ;;  %s2306_s1 = inlined_call_operand.vmem [shape: f32[8,32], index: 1, kind: input, shape index: {}, may-alias: {1,9}]   ;;  %s2307_s2 = inlined_call_operand.vmem [shape: f32[8,32], index: 2, kind: input, shape index: {}, may-alias: {2,10}]   ;;  %s2308_s3 = inlined_call_operand.hbm [shape: f32[16,128], index: 3, kind: input, shape index: {}]   ;;  %s2309_s4 = inlined_call_operand.vmem [shape: f32[32,128], index: 4, kind: input, shape index: {}]   ;;  %s2310_s5 = inlined_call_operand.vmem [shape: f32[1,128], index: 5, kind: input, shape index: {}]   ;;  %s2311_s6 = inlined_call_operand.hbm [shape: f32[32,128], index: 6, kind: input, shape index: {}]   ;;  %s2312_s7 = inlined_call_operand.vmem [shape: f32[1,128], index: 7, kind: input, shape index: {}]   ;;  %s2313_s8 = inlined_call_operand.hbm [shape: f32[8,128], index: 8, kind: output, shape index: {0}]   ;;  %s2314_s9 = inlined_call_operand.vmem [shape: f32[8,32], index: 9, kind: output, shape index: {1}, may-alias: {1,9}]   ;;  %s2315_s10 = inlined_call_operand.vmem [shape: f32[8,32], index: 10, kind: output, shape index: {2}, may-alias: {2,10}]  }
   0x1   :  { %17 = vsyncpa [#allocation6], 0 }
   0x2   :  { %18 = vsyncpa [#allocation4], 0  ;;  %s1955_s13 = smov [#allocation2]  }
   0x3   :  { %s30_s14 = sshll.u32 %s1955_s13, 4  ;;  %s31_s14 = int_to_ptr.vmem [resolvable:$true] %s30_s14 }
   0x4   :  { %s1897_s15 = scalar_lea.vmem %s31_s14, 256  ;;  %p1902_p1 = scmp.lt.s32.totalorder %s31_s14, %s31_s14 }
   0x5   :  { %p1898_p0 = scmp.ne.s32.totalorder %s31_s14, %s1897_s15  ;;  %p1903_p2 = scmp.lt.s32.totalorder %s1897_s15, %s1897_s15 }
   0x7   :  { %p1904_p3 = por %p1903_p2, %p1902_p1 }
   0x9   :  { %p1905_p4 = pnand %p1904_p3, %p1898_p0 }
   0xb   :  { %1908 = shalt.err (!%p1905_p4)
}
   0xc   :  { %s1956_s16 = smov 128   ;;  %s1957_s17 = smov 8  }
   0xd   :  { %36 = dma.hbm_to_vmem [thread:$0]  %s2308_s3, 256, %s31_s14, [#allocation3], %s1956_s16, %s1956_s16, %s1957_s17  }
   0xe   :  { %s1958_s20 = smov [#allocation5]  }
   0xf   :  { %s46_s21 = sshll.u32 %s1958_s20, 4  ;;  %s47_s21 = int_to_ptr.vmem [resolvable:$true] %s46_s21 }
  0x10   :  { %s1917_s22 = scalar_lea.vmem %s47_s21, 512  ;;  %p1922_p6 = scmp.lt.s32.totalorder %s47_s21, %s47_s21 }
  0x11   :  { %p1918_p5 = scmp.ne.s32.totalorder %s47_s21, %s1917_s22  ;;  %p1923_p7 = scmp.lt.s32.totalorder %s1917_s22, %s1917_s22 }
  0x13   :  { %p1924_p8 = por %p1923_p7, %p1922_p6 }
  0x15   :  { %p1925_p9 = pnand %p1924_p8, %p1918_p5 }
  0x17   :  { %1928 = shalt.err (!%p1925_p9)
}
  0x18   :  { %52 = dma.hbm_to_vmem [thread:$0]  %s2311_s6, 512, %s47_s21, [#allocation6], %s1956_s16, %s1956_s16, %s1957_s17  }
  0x19   :  { %1949 = dma.done.wait [#allocation3], 256  }
  0x1a   :  { %1950 = vsyncadd [#allocation3], 4294967040 }
  0x1b   :  { %1951 = dma.done.wait [#allocation6], 512  }
  0x1c   :  { %1952 = vsyncadd [#allocation6], 4294966784  ;;  %v1959_v0 = vmov 0   ;;  %v1960_v1 = vmov 0.0   ;;  %vm1961_vm0 = vmmov 0   ;;  %vm78_vm1 = vcmask 261120  }
  0x1d   :  { %1880 = vset.pattern.permute.xlu0 %v1959_v0  ;;  %1695 = vmatprep.subr.mxu0 %v1960_v1  ;;  %v61_v2 = vld [vmem:[%s2305_s0] sm:$0xff]  ;;  %v77_v3 = vld [vmem:[%s2309_s4 + $0x18] sm:$0xff]  ;;  %v76_v4 = vld [vmem:[%s2309_s4 + $0x10] sm:$0xff]  ;;  %s1962_s14 = smov 32   ;;  %v62_v47 = vlaneseq  ;;  %vm567_vm2 = vcmask 130048   ;;  %s1963_s16 = smov 64  }
  0x1e   :  { %1706 = vmatprep.subr.mxu1 %v1960_v1  ;;  %1703 = vmatprep.mubr.msk.f32.mxu0 %vm1961_vm0, %v1960_v1  ;;  %v2042_v5 = vand.u32 4294901760, %v77_v3  ;;  %v2044_v6 = vand.u32 4294901760, %v76_v4  ;;  %v75_v7 = vld [vmem:[%s2309_s4 + $0x8] sm:$0xff]  ;;  %v74_v8 = vld [vmem:[%s2309_s4] sm:$0xff]  ;;  %s1964_s19 = smov 96   ;;  %s1965_s21 = smov [#allocation7]  }
  0x1f   :  { %1714 = vmatprep.mubr.msk.f32.mxu1 %vm1961_vm0, %v1960_v1  ;;  %65 = vperm.xlu0 %1880, %v61_v2   ;;  %v70_v9 = vld [vmem:[%s2306_s1] sm:$0xff]  ;;  %v2055_v10 = vand.u32 4294901760, %v75_v7  ;;  %v2057_v11 = vand.u32 4294901760, %v74_v8  ;;  %v73_v34 = vld [vmem:[#allocation2 + $0x8] sm:$0xff]  ;;  %v2170_v48 = vand.u32 127, %v62_v47  ;;  %s1593_s22 = sshll.u32 %s1965_s21, 4  ;;  %s1594_s22 = int_to_ptr.vmem [resolvable:$true] %s1593_s22 }
  0x20   :  { %v80_v12 = vsel %vm78_vm1, %v70_v9, 0  ;;  %1696 = vmatpush3.msra.mxu0 %v2042_v5  ;;  %v2062_v13 = vsub.f32 %v77_v3, %v2042_v5  ;;  %v2065_v14 = vsub.f32 %v76_v4, %v2044_v6  ;;  %v72_v35 = vld [vmem:[#allocation2] sm:$0xff]  ;;  %v2100_v36 = vand.u32 4294901760, %v73_v34  ;;  %s1929_s23 = scalar_lea.vmem %s1594_s22, 128  ;;  %p1934_p11 = scmp.lt.s32.totalorder %s1594_s22, %s1594_s22 }
  0x21   :  { %v2067_v15 = vand.u32 4294901760, %v80_v12  ;;  %1697 = vmatprep.subr.mxu0 %v1960_v1  ;;  %v2071_v16 = vsub.f32 %v75_v7, %v2055_v10  ;;  %v2074_v17 = vsub.f32 %v74_v8, %v2057_v11  ;;  %v2106_v37 = vand.u32 4294901760, %v72_v35  ;;  %v71_v46 = vld [vmem:[%s2307_s2] sm:$0xff]  ;;  %p1930_p10 = scmp.ne.s32.totalorder %s1594_s22, %s1929_s23  ;;  %p1935_p12 = scmp.lt.s32.totalorder %s1929_s23, %s1929_s23 }
  0x22   :  { %v188_v18 = vand.u32 4294901760, %v2062_v13  ;;  %1698 = vmatpush3.msra.mxu0 %v2044_v6  ;;  %v195_v19 = vand.u32 4294901760, %v2065_v14  ;;  %v2113_v38 = vsub.f32 %v73_v34, %v2100_v36  ;;  %1048 = vrot.lane.b32.xlu1 %v71_v46, %s1962_s14  ;;  %vm1038_vm4 = vcmp.ge.s32.totalorder %v2170_v48, 64 }
  0x23   :  { %v152_v20 = vsub.f32 %v80_v12, %v2067_v15  ;;  %1699 = vmatprep.subr.mxu0 %v1960_v1  ;;  %v202_v21 = vand.u32 4294901760, %v2071_v16  ;;  %v209_v22 = vand.u32 4294901760, %v2074_v17  ;;  %v2121_v39 = vsub.f32 %v72_v35, %v2106_v37  ;;  %p1936_p13 = por %p1935_p12, %p1934_p11 }
  0x24   :  { %v189_v23 = vsub.f32 %v2062_v13, %v188_v18  ;;  %v196_v24 = vsub.f32 %v2065_v14, %v195_v19  ;;  %1700 = vmatpush3.msra.mxu0 %v2055_v10  ;;  %v679_v40 = vand.u32 4294901760, %v2113_v38  ;;  %vm1039_vm5 = vcmp.lt.s32.totalorder %v2170_v48, 96 }
  0x25   :  { %v153_v25 = vand.u32 4294901760, %v152_v20  ;;  %1701 = vmatprep.subr.mxu0 %v1960_v1  ;;  %v203_v26 = vsub.f32 %v2071_v16, %v202_v21  ;;  %v210_v29 = vsub.f32 %v2074_v17, %v209_v22  ;;  %v686_v41 = vand.u32 4294901760, %v2121_v39  ;;  %vm1040_vm6 = vmand %vm1038_vm4, %vm1039_vm5  ;;  %p1937_p0 = pnand %p1936_p13, %p1930_p10 }
  0x26   :  { %v190_v27 = vand.u32 4294901760, %v189_v23  ;;  %v197_v28 = vand.u32 4294901760, %v196_v24  ;;  %1702 = vmatpush3.msra.mxu0 %v2057_v11  ;;  %v680_v42 = vsub.f32 %v2113_v38, %v679_v40 }
  0x27   :  { %v154_v30 = vsub.f32 %v152_v20, %v153_v25  ;;  %1717 = vmatprep.subr.mxu0 %v1960_v1  ;;  %v204_v31 = vand.u32 4294901760, %v203_v26  ;;  %v211_v33 = vand.u32 4294901760, %v210_v29  ;;  %v687_v43 = vsub.f32 %v2121_v39, %v686_v41  ;;  %v1615_v26 = vld [vmem:[%s2310_s5] ss:$0 sm:$0xff] }
  0x28   :  { %1707 = vmatpush3.msra.mxu1 %v190_v27  ;;  %v681_v44 = vand.u32 4294901760, %v680_v42  ;;  %v1081_v42 = vld [vmem:[#allocation5 + $0x18] sm:$0xff] }
  0x29   :  { %v155_v32 = vand.u32 4294901760, %v154_v30  ;;  %1708 = vmatprep.subr.mxu1 %v1960_v1  ;;  %v688_v45 = vand.u32 4294901760, %v687_v43  ;;  %v1080_v43 = vld [vmem:[#allocation5 + $0x10] sm:$0xff] }
  0x2a   :  { %1709 = vmatpush3.msra.mxu1 %v197_v28  ;;  %v2218_v46 = vand.u32 4294901760, %v1080_v43 }
  0x2b   :  { %1704 = vmatmul.mubr.f32.vlgmr.msra.gmra.mxu0 %v155_v32  ;;  %1710 = vmatprep.subr.mxu1 %v1960_v1 }
  0x2c   :  { %1718 = vmatpush3.msra.mxu0 %v2062_v13  ;;  %1711 = vmatpush3.msra.mxu1 %v204_v31 }
  0x2d   :  { %1719 = vmatprep.subr.mxu0 %v1960_v1  ;;  %1712 = vmatprep.subr.mxu1 %v1960_v1 }
  0x2e   :  { %1720 = vmatpush3.msra.mxu0 %v2065_v14  ;;  %1713 = vmatpush3.msra.mxu1 %v211_v33 }
  0x2f   :  { %1721 = vmatprep.subr.mxu0 %v1960_v1  ;;  %1728 = vmatprep.subr.mxu1 %v1960_v1 }
  0x30   :  { %1715 = vmatmul.mubr.f32.vlgmr.msra.gmra.mxu1 %v2067_v15  ;;  %1722 = vmatpush3.msra.mxu0 %v2071_v16 }
  0x31   :  { %1729 = vmatpush3.msra.mxu1 %v2042_v5  ;;  %1723 = vmatprep.subr.mxu0 %v1960_v1 }
  0x32   :  { %1730 = vmatprep.subr.mxu1 %v1960_v1  ;;  %1724 = vmatpush3.msra.mxu0 %v2074_v17 }
  0x33   :  { %1731 = vmatpush3.msra.mxu1 %v2044_v6  ;;  %1725 = vmatprep.mubr.msk.f32.mxu0 %vm1961_vm0, %v1960_v1 }
  0x34   :  { %1732 = vmatprep.subr.mxu1 %v1960_v1  ;;  %1739 = vmatprep.subr.mxu0 %v1960_v1 }
  0x35   :  { %1733 = vmatpush3.msra.mxu1 %v2055_v10  ;;  %1726 = vmatmul.mubr.f32.vlgmr.msra.gmra.mxu0 %v152_v20 }
  0x36   :  { %1734 = vmatprep.subr.mxu1 %v1960_v1  ;;  %1736 = vmatprep.mubr.msk.f32.mxu1 %vm1961_vm0, %v1960_v1 }
  0x37   :  { %1735 = vmatpush3.msra.mxu1 %v2057_v11  ;;  %1740 = vmatpush3.msra.mxu0 %v188_v18 }
  0x38   :  { %1750 = vmatprep.subr.mxu1 %v1960_v1  ;;  %1737 = vmatmul.mubr.f32.vlgmr.msra.gmra.mxu1 %v153_v25 }
  0x39   :  { %1741 = vmatprep.subr.mxu0 %v1960_v1  ;;  %1751 = vmatpush3.msra.mxu1 %v2042_v5 }
  0x3a   :  { %1742 = vmatpush3.msra.mxu0 %v195_v19  ;;  %1752 = vmatprep.subr.mxu1 %v1960_v1 }
  0x3b   :  { %1743 = vmatprep.subr.mxu0 %v1960_v1  ;;  %1753 = vmatpush3.msra.mxu1 %v2044_v6 }
  0x3c   :  { %1744 = vmatpush3.msra.mxu0 %v202_v21  ;;  %1754 = vmatprep.subr.mxu1 %v1960_v1 }
  0x3d   :  { %1745 = vmatprep.subr.mxu0 %v1960_v1  ;;  %1755 = vmatpush3.msra.mxu1 %v2055_v10 }
  0x3e   :  { %1746 = vmatpush3.msra.mxu0 %v209_v22  ;;  %1747 = vmatprep.mubr.msk.f32.mxu0 %vm1961_vm0, %v1960_v1 }
  0x3f   :  { %1756 = vmatprep.subr.mxu1 %v1960_v1  ;;  %1748 = vmatmul.mubr.f32.vlgmr.msra.gmra.mxu0 %v2067_v15 }
  0x40   :  { %1757 = vmatpush3.msra.mxu1 %v2057_v11  ;;  %1758 = vmatprep.mubr.msk.f32.mxu1 %vm1961_vm0, %v1960_v1 }
  0x41   :  { %1768 = vmatprep.subr.mxu1 %v1960_v1  ;;  %1759 = vmatmul.mubr.f32.vlgmr.msra.gmra.mxu1 %v2067_v15 }
  0x42   :  { %1761 = vmatprep.subr.mxu0 %v1960_v1  ;;  %1769 = vmatpush3.msra.mxu1 %v681_v44  ;;  %v1079_v44 = vld [vmem:[#allocation5 + $0x8] sm:$0xff] }
  0x43   :  { %1772 = vmatprep.mubr.msk.f32.mxu1 %vm1961_vm0, %v1960_v1  ;;  %1770 = vmatprep.subr.mxu1 %v1960_v1  ;;  %v2220_v47 = vand.u32 4294901760, %v1079_v44 }
  0x44   :  { %1762 = vmatpush3.msra.mxu0 %v2100_v36  ;;  %1771 = vmatpush3.msra.mxu1 %v688_v45  ;;  %v1116_v45 = vand.u32 4294901760, %v1081_v42 }
  0x45   :  { %1763 = vmatprep.subr.mxu0 %v1960_v1  ;;  %1782 = vmatprep.subr.mxu1 %v1960_v1 }
  0x46   :  { %1764 = vmatpush3.msra.mxu0 %v2106_v37  ;;  %1765 = vmatprep.mubr.msk.f32.mxu0 %vm1961_vm0, %v1960_v1 }
  0x47   :  { %1775 = vmatprep.subr.mxu0 %v1960_v1 }
  0x9a   :  { %v66_v49 = vpop.permute.xlu0 %65 }
  0x9b   :  { %vm67_vm3 = vcmp.eq.s32.totalorder %v2170_v48, %v66_v49  ;;  %v2222_v48 = vsub.f32 %v1081_v42, %v1116_v45  ;;  %v2225_v49 = vsub.f32 %v1080_v43, %v2218_v46 }
  0x9c   :  { %v1611_v50 = vsel %vm67_vm3, 1.0, %v1960_v1 }
  0x9d   :  { %v569_v51 = vsel %vm567_vm2, %v1611_v50, 0  ;;  %1773 = vmatmul.mubr.msk.f32.vlgmr.msra.gmra.mxu1 %vm567_vm2, %v1611_v50 }
  0x9e   :  { %v639_v52 = vsub.f32 %v569_v51, %v569_v51  ;;  %1783 = vmatpush3.msra.mxu1 %v2100_v36  ;;  %1786 = vmatprep.mubr.msk.f32.mxu1 %vm1961_vm0, %v1960_v1  ;;  %v1197_v51 = vand.u32 4294901760, %v2222_v48 }
  0x9f   :  { %1784 = vmatprep.subr.mxu1 %v1960_v1 }
  0xa0   :  { %1785 = vmatpush3.msra.mxu1 %v2106_v37  ;;  %v640_v53 = vand.u32 4294901760, %v639_v52 }
  0xa1   :  { %1796 = vmatprep.subr.mxu1 %v1960_v1 }
  0xa2   :  { %1787 = vmatmul.mubr.f32.vlgmr.msra.gmra.mxu1 %v640_v53  ;;  %v641_v54 = vsub.f32 %v639_v52, %v640_v53 }
  0xa3   :  { %1797 = vmatpush3.msra.mxu1 %v2100_v36  ;;  %1800 = vmatprep.mubr.msk.f32.mxu1 %vm1961_vm0, %v1960_v1 }
  0xa4   :  { %1798 = vmatprep.subr.mxu1 %v1960_v1  ;;  %v642_v55 = vand.u32 4294901760, %v641_v54  ;;  %v1198_v54 = vsub.f32 %v2222_v48, %v1197_v51 }
  0xa5   :  { %1799 = vmatpush3.msra.mxu1 %v2106_v37 }
  0xa6   :  { %1766 = vmatmul.mubr.f32.vlgmr.msra.gmra.mxu0 %v642_v55  ;;  %1801 = vmatmul.mubr.msk.f32.vlgmr.msra.gmra.mxu1 %vm567_vm2, %v1611_v50 }
  0xa7   :  { %1776 = vmatpush3.msra.mxu0 %v2113_v38  ;;  %1779 = vmatprep.mubr.msk.f32.mxu0 %vm1961_vm0, %v1960_v1  ;;  %v1049_v38 = vpop.permute.xlu1 %1048 }
  0xa8   :  { %1777 = vmatprep.subr.mxu0 %v1960_v1  ;;  %1814 = vmatprep.subr.mxu1 %v1960_v1 }
  0xa9   :  { %1778 = vmatpush3.msra.mxu0 %v2121_v39  ;;  %1822 = vmatprep.mubr.msk.f32.mxu1 %vm1961_vm0, %v1960_v1 }
  0xaa   :  { %1789 = vmatprep.subr.mxu0 %v1960_v1  ;;  %1780 = vmatmul.mubr.f32.vlgmr.msra.gmra.mxu0 %v639_v52  ;;  %v1204_v52 = vand.u32 4294901760, %v2225_v49 }
  0xab   :  { %1790 = vmatpush3.msra.mxu0 %v679_v40  ;;  %1793 = vmatprep.mubr.msk.f32.mxu0 %vm1961_vm0, %v1960_v1 }
  0xac   :  { %1791 = vmatprep.subr.mxu0 %v1960_v1  ;;  %v1205_v55 = vsub.f32 %v2225_v49, %v1204_v52 }
  0xad   :  { %1792 = vmatpush3.msra.mxu0 %v686_v41 }
  0xae   :  { %1794 = vmatmul.mubr.msk.f32.vlgmr.msra.gmra.mxu0 %vm567_vm2, %v1611_v50  ;;  %1803 = vmatprep.subr.mxu0 %v1960_v1  ;;  %v2228_v50 = vsub.f32 %v1079_v44, %v2220_v47 }
  0xaf   :  { %1811 = vmatprep.mubr.msk.f32.mxu0 %vm1961_vm0, %v1960_v1  ;;  %1804 = vmatpush3.msra.mxu0 %v1116_v45 }
  0xb0   :  { %1805 = vmatprep.subr.mxu0 %v1960_v1  ;;  %v1211_v53 = vand.u32 4294901760, %v2228_v50 }
  0xb1   :  { %1806 = vmatpush3.msra.mxu0 %v2218_v46 }
  0xb2   :  { %1807 = vmatprep.subr.mxu0 %v1960_v1 }
  0xb3   :  { %1808 = vmatpush3.msra.mxu0 %v2220_v47 }
  0xb4   :  { %1809 = vmatprep.subr.mxu0 %v1960_v1 }
  0xeb   :  { %v157_v56 = vpop.f32.mrf.mxu0 }
  0xed   :  { %v1705_v57 = vpop.f32.mrf.mxu0 }
  0xee   :  { %v1199_v57 = vand.u32 4294901760, %v1198_v54 }
  0xf0   :  { %v248_v58 = vpop.f32.mrf.mxu1  ;;  %1815 = vmatpush3.msra.mxu1 %v1199_v57 }
  0xf1   :  { %v249_v59 = vadd.f32 %v248_v58, %v157_v56  ;;  %v1212_v56 = vsub.f32 %v2228_v50, %v1211_v53  ;;  %v1206_v58 = vand.u32 4294901760, %v1205_v55  ;;  %1816 = vmatprep.subr.mxu1 %v1960_v1 }
  0xf2   :  { %v1716_v60 = vpop.f32.mrf.mxu1 }
  0xf3   :  { %v1213_v60 = vand.u32 4294901760, %v1212_v56  ;;  %1817 = vmatpush3.msra.mxu1 %v1206_v58 }
  0xf4   :  { %1818 = vmatprep.subr.mxu1 %v1960_v1 }
  0xf5   :  { %v328_v61 = vpop.f32.mrf.mxu0  ;;  %1819 = vmatpush3.msra.mxu1 %v1213_v60 }
  0xf6   :  { %v329_v62 = vadd.f32 %v328_v61, %v249_v59  ;;  %1820 = vmatprep.subr.mxu1 %v1960_v1  ;;  %v1078_v61 = vld [vmem:[#allocation5] sm:$0xff] }
  0xf7   :  { %v1727_v63 = vpop.f32.mrf.mxu0 }
  0xf8   :  { %v405_v0 = vpop.f32.mrf.mxu1 }
  0xf9   :  { %v406_v2 = vadd.f32 %v405_v0, %v329_v62  ;;  %v1125_v62 = vand.u32 4294901760, %v1078_v61 }
  0xfa   :  { %v1738_v3 = vpop.f32.mrf.mxu1 }
  0xfb   :  { %v1217_v63 = vsub.f32 %v1078_v61, %v1125_v62  ;;  %1810 = vmatpush3.msra.mxu0 %v1125_v62 }
  0xfc   :  { %1825 = vmatprep.subr.mxu0 %v1960_v1 }
  0xfd   :  { %v1218_v0 = vand.u32 4294901760, %v1217_v63 }
  0xff   :  { %v488_v4 = vpop.f32.mrf.mxu0 }
 0x100   :  { %v489_v5 = vadd.f32 %v488_v4, %v406_v2  ;;  %v1219_v2 = vsub.f32 %v1217_v63, %v1218_v0 }
 0x101   :  { %v563_v6 = vpop.f32.mrf.mxu1  ;;  %v1749_v7 = vpop.f32.mrf.mxu0 }
 0x102   :  { %v564_v8 = vadd.f32 %v563_v6, %v489_v5  ;;  %v1220_v3 = vand.u32 4294901760, %v1219_v2 }
 0x103   :  { %v1760_v9 = vpop.f32.mrf.mxu1 }
 0x104   :  { %1821 = vmatpush3.msra.mxu1 %v1220_v3 }
 0x105   :  { %1836 = vmatprep.subr.mxu1 %v1960_v1 }
 0x15d   :  { %v725_v10 = vpop.f32.mrf.mxu1 }
 0x15f   :  { %v1774_v11 = vpop.f32.mrf.mxu1 }
 0x162   :  { %v876_v12 = vpop.f32.mrf.mxu1 }
 0x164   :  { %v1788_v13 = vpop.f32.mrf.mxu1 }
 0x166   :  { %v644_v14 = vpop.f32.mrf.mxu0  ;;  %v1026_v15 = vpop.f32.mrf.mxu1 }
 0x167   :  { %v645_v16 = vadd.f32 %v644_v14, %v564_v8 }
 0x168   :  { %v1767_v17 = vpop.f32.mrf.mxu0  ;;  %v1802_v18 = vpop.f32.mrf.mxu1 }
 0x169   :  { %v726_v19 = vadd.f32 %v725_v10, %v645_v16 }
 0x16a   :  { %v801_v20 = vpop.f32.mrf.mxu0 }
 0x16b   :  { %v802_v21 = vadd.f32 %v801_v20, %v726_v19  ;;  %v1616_v19 = vld [vmem:[%s2312_s7] ss:$0 sm:$0xff] }
 0x16c   :  { %v1781_v22 = vpop.f32.mrf.mxu0 }
 0x16d   :  { %v877_v23 = vadd.f32 %v876_v12, %v802_v21 }
 0x16e   :  { %v953_v24 = vpop.f32.mrf.mxu0 }
 0x16f   :  { %v954_v25 = vadd.f32 %v953_v24, %v877_v23 }
 0x170   :  { %v1795_v27 = vpop.f32.mrf.mxu0 }
 0x171   :  { %v1027_v28 = vadd.f32 %v1026_v15, %v954_v25 }
 0x173   :  { %v1037_v29 = vadd.f32 %v1615_v26, %v1027_v28 }
 0x175   :  { %v1041_v30 = vmul.f32 0.5, %v1037_v29 }
 0x177   :  { %v1042_v31 = vsel %vm1040_vm6, %v1037_v29, %v1041_v30 }
 0x178   :  { %1881 = vtanh.f32 %v1042_v31 }
 0x185   :  { %v1882_v32 = vpop.eup %1881 }
 0x186   :  { %v1044_v33 = vadd.f32 1.0, %v1882_v32 }
 0x188   :  { %v1045_v34 = vmul.f32 0.5, %v1044_v33 }
 0x18a   :  { %v1046_v35 = vsel %vm1040_vm6, %v1882_v32, %v1045_v34 }
 0x18b   :  { %1053 = vrot.lane.b32.xlu0 %v1046_v35, %s1963_s16  ;;  %v1051_v39 = vmul.f32 %v1049_v38, %v1046_v35 }
 0x1fd   :  { %v1054_v36 = vpop.permute.xlu0 %1053 }
 0x1fe   :  { %v1056_v37 = vmul.f32 %v1054_v36, %v1046_v35 }
 0x200   :  { %1058 = vrot.lane.b32.xlu1 %v1056_v37, %s1962_s14 }
 0x272   :  { %v1059_v40 = vpop.permute.xlu1 %1058 }
 0x273   :  { %v2215_v41 = vadd.f32 %v1059_v40, %v1051_v39 }
 0x275   :  { %1883 = vtanh.f32 %v2215_v41 }
 0x282   :  { %v1884_v59 = vpop.eup %1883 }
 0x283   :  { %1064 = vrot.lane.b32.xlu0 %v1884_v59, %s1963_s16 }
 0x2f5   :  { %v1065_v4 = vpop.permute.xlu0 %1064 }
 0x2f6   :  { %v1067_v5 = vmul.f32 %v1065_v4, %v1046_v35 }
 0x2f8   :  { %1069 = vrot.lane.b32.xlu1 %v1067_v5, %s1962_s14 }
 0x36a   :  { %v1070_v6 = vpop.permute.xlu1 %1069 }
 0x36b   :  { %1072 = vst.msk [vmem:[%s2314_s9] sm:$0xff] %vm78_vm1, %v1070_v6  ;;  %v1089_v7 = vsel %vm78_vm1, %v1070_v6, 0 }
 0x36c   :  { %v1160_v8 = vand.u32 4294901760, %v1089_v7 }
 0x36e   :  { %v1161_v9 = vsub.f32 %v1089_v7, %v1160_v8  ;;  %1823 = vmatmul.mubr.f32.vlgmr.msra.gmra.mxu1 %v1160_v8 }
 0x36f   :  { %1837 = vmatpush3.msra.mxu1 %v1116_v45  ;;  %1844 = vmatprep.mubr.msk.f32.mxu1 %vm1961_vm0, %v1960_v1 }
 0x370   :  { %v1162_v10 = vand.u32 4294901760, %v1161_v9  ;;  %1838 = vmatprep.subr.mxu1 %v1960_v1 }
 0x371   :  { %1839 = vmatpush3.msra.mxu1 %v2218_v46 }
 0x372   :  { %v1163_v11 = vsub.f32 %v1161_v9, %v1162_v10  ;;  %1840 = vmatprep.subr.mxu1 %v1960_v1 }
 0x373   :  { %1841 = vmatpush3.msra.mxu1 %v2220_v47 }
 0x374   :  { %1842 = vmatprep.subr.mxu1 %v1960_v1  ;;  %v1164_v12 = vand.u32 4294901760, %v1163_v11 }
 0x375   :  { %1843 = vmatpush3.msra.mxu1 %v1125_v62 }
 0x376   :  { %1845 = vmatmul.mubr.f32.vlgmr.msra.gmra.mxu1 %v1162_v10  ;;  %1858 = vmatprep.subr.mxu1 %v1960_v1 }
 0x377   :  { %1812 = vmatmul.mubr.f32.vlgmr.msra.gmra.mxu0 %v1164_v12  ;;  %1859 = vmatpush3.msra.mxu1 %v1116_v45 }
 0x378   :  { %1826 = vmatpush3.msra.mxu0 %v2222_v48  ;;  %1860 = vmatprep.subr.mxu1 %v1960_v1 }
 0x379   :  { %1827 = vmatprep.subr.mxu0 %v1960_v1  ;;  %1861 = vmatpush3.msra.mxu1 %v2218_v46 }
 0x37a   :  { %1828 = vmatpush3.msra.mxu0 %v2225_v49  ;;  %1862 = vmatprep.subr.mxu1 %v1960_v1 }
 0x37b   :  { %1829 = vmatprep.subr.mxu0 %v1960_v1  ;;  %1863 = vmatpush3.msra.mxu1 %v2220_v47 }
 0x37c   :  { %1830 = vmatpush3.msra.mxu0 %v2228_v50  ;;  %1864 = vmatprep.subr.mxu1 %v1960_v1 }
 0x37d   :  { %1831 = vmatprep.subr.mxu0 %v1960_v1  ;;  %1833 = vmatprep.mubr.msk.f32.mxu0 %vm1961_vm0, %v1960_v1 }
 0x37e   :  { %1832 = vmatpush3.msra.mxu0 %v1217_v63  ;;  %1865 = vmatpush3.msra.mxu1 %v1125_v62 }
 0x37f   :  { %1866 = vmatprep.mubr.msk.f32.mxu1 %vm1961_vm0, %v1960_v1  ;;  %1834 = vmatmul.mubr.f32.vlgmr.msra.gmra.mxu0 %v1161_v9 }
 0x380   :  { %1847 = vmatprep.subr.mxu0 %v1960_v1  ;;  %1867 = vmatmul.mubr.f32.vlgmr.msra.gmra.mxu1 %v1160_v8 }
 0x381   :  { %1848 = vmatpush3.msra.mxu0 %v1197_v51  ;;  %1855 = vmatprep.mubr.msk.f32.mxu0 %vm1961_vm0, %v1960_v1 }
 0x382   :  { %1849 = vmatprep.subr.mxu0 %v1960_v1 }
 0x383   :  { %1850 = vmatpush3.msra.mxu0 %v1204_v52 }
 0x384   :  { %1851 = vmatprep.subr.mxu0 %v1960_v1 }
 0x385   :  { %1852 = vmatpush3.msra.mxu0 %v1211_v53 }
 0x386   :  { %1853 = vmatprep.subr.mxu0 %v1960_v1 }
 0x387   :  { %1854 = vmatpush3.msra.mxu0 %v1218_v0 }
 0x388   :  { %1856 = vmatmul.mubr.f32.vlgmr.msra.gmra.mxu0 %v1160_v8 }
 0x42e   :  { %v1257_v13 = vpop.f32.mrf.mxu1 }
 0x430   :  { %v1824_v14 = vpop.f32.mrf.mxu1 }
 0x436   :  { %v1414_v15 = vpop.f32.mrf.mxu1 }
 0x437   :  { %v1166_v16 = vpop.f32.mrf.mxu0 }
 0x438   :  { %v1846_v17 = vpop.f32.mrf.mxu1  ;;  %v1167_v20 = vadd.f32 %v1616_v19, %v1166_v16 }
 0x439   :  { %v1813_v18 = vpop.f32.mrf.mxu0 }
 0x43a   :  { %v1258_v23 = vadd.f32 %v1257_v13, %v1167_v20 }
 0x43f   :  { %v1337_v21 = vpop.f32.mrf.mxu0 }
 0x440   :  { %v1572_v22 = vpop.f32.mrf.mxu1  ;;  %v1338_v26 = vadd.f32 %v1337_v21, %v1258_v23 }
 0x441   :  { %v1835_v24 = vpop.f32.mrf.mxu0 }
 0x442   :  { %v1868_v25 = vpop.f32.mrf.mxu1  ;;  %v1415_v1 = vadd.f32 %v1414_v15, %v1338_v26 }
 0x448   :  { %v1497_v27 = vpop.f32.mrf.mxu0 }
 0x449   :  { %v1498_v28 = vadd.f32 %v1497_v27, %v1415_v1 }
 0x44a   :  { %v1857_v29 = vpop.f32.mrf.mxu0 }
 0x44b   :  { %v1573_v30 = vadd.f32 %v1572_v22, %v1498_v28 }
 0x44d   :  { %1576 = vmax.xlane.f32.xlu0 %v1573_v30 }
 0x463   :  { %1074 = vrot.lane.b32.xlu0 %v2215_v41, %s1964_s19 }
 0x4d6   :  { %v1577_v31 = vpop.xlane.xlu0 %1576 }
 0x4d7   :  { %v1578_v32 = vsub.f32 %v1573_v30, %v1577_v31 }
 0x4d9   :  { %v1579_v33 = vmul.f32 1.442695, %v1578_v32 }
 0x4da   :  { %v1075_v34 = vpop.permute.xlu0 %1074 }
 0x4db   :  { %1885 = vpow2.f32 %v1579_v33  ;;  %1077 = vst.msk [vmem:[%s2315_s10] sm:$0xff] %vm78_vm1, %v1075_v34 }
 0x4e8   :  { %v1886_v35 = vpop.eup %1885 }
 0x4e9   :  { %1581 = vadd.xlane.f32.xlu1 %v1886_v35 }
 0x572   :  { %v1582_v36 = vpop.xlane.xlu1 %1581 }
 0x573   :  { %1887 = vlog2.f32 %v1582_v36 }
 0x580   :  { %v1888_v37 = vpop.eup %1887 }
 0x581   :  { %v1584_v38 = vmul.f32 0.6931472, %v1888_v37 }
 0x583   :  { %v1585_v39 = vsub.f32 %v1578_v32, %v1584_v38 }
 0x585   :  { %1586 = vst [vmem:[#allocation7] sm:$0xff] %v1585_v39 }
 0x586   :  { %1940 = shalt.err (!%p1937_p0)
}
 0x587   :  { %1596 = dma.vmem_to_hbm [thread:$0]  %s1594_s22, 128, %s2313_s8, [#allocation4]  }
 0x588   :  { %1953 = dma.done.wait [#allocation4], 128  }
 0x589   :  { %1954 = vsyncadd [#allocation4], 4294967168 }
 0x58a   :  { %1608 = vsyncpa [#allocation3], 1 }
 0x58b   :  { %1609 = vsyncpa [#allocation6], 1 }
 0x58c   :  { %1610 = vsyncpa [#allocation4], 1 }

</bundles_post_ra>
